<compile_context>
chip_gen: v7x
topology: tpu7x:2x2x1
jax: 0.10.0
libtpu: 0.0.40
codegen_flags: <defaults>
</compile_context>

<pallas_src>
import jax
import jax.numpy as jnp
import numpy as np
from jax.experimental import pallas as pl
from jax.experimental.pallas import tpu as pltpu

_LANE = 128


def _add_pe_kernel(x_ref, pe_ref, o_ref):
    # x_ref: (tb, tl) batch rows; pe_ref: (1, tl) shared positional encodings.
    # Sublane-broadcast of pe over tb rows; mixed-precision inputs are promoted
    # in-register (VPU) and cast on the store, so the wrapper never pays a
    # separate full HBM cast pass.
    o_ref[...] = (x_ref[...] + pe_ref[...]).astype(o_ref.dtype)


def _choose_tiles(B, L, min_itemsize, max_itemsize):
    """Pick (tb, tl): batch rows and collapsed-L lanes per block."""
    # Sublane granularity for the narrowest dtype (f32: 8, bf16: 16, int8: 32).
    sub_mult = 8 * max(1, 4 // max(1, min_itemsize))
    lane_tile_bytes = 256 << 10     # per-block lane bytes cap -> padded pe block <= ~2 MiB
    target_block_bytes = 2 << 20    # ~2 MiB x/out block (~85% of f32 HBM roofline)

    tl_cap = max(_LANE, ((lane_tile_bytes // max_itemsize) // _LANE) * _LANE)
    # Full dim when it fits (no (8,128) divisibility concern); otherwise a
    # 128-multiple tile -- a ragged last L block is masked by Pallas.
    tl = L if L <= tl_cap else tl_cap

    if B <= sub_mult:
        tb = B                       # full dim
    else:
        tb = max(1, target_block_bytes // (tl * max_itemsize))
        tb = max(sub_mult, (tb // sub_mult) * sub_mult)
        tb = min(tb, B)
        # Keep >= 8 grid steps so both v7x TensorCores stay busy and the DMA
        # pipeline streams instead of serializing load / add / store.
        while (pl.cdiv(B, tb) * pl.cdiv(L, tl)) < 8 and tb > sub_mult:
            tb = max(sub_mult, ((tb // 2) // sub_mult) * sub_mult)
    return tb, tl


def _pallas_add_pe(x2d, pe2d, out_dtype, donate_x):
    """x2d: (B, L), pe2d: (1, L). Returns x2d + pe2d (broadcast over B)."""
    B, L = x2d.shape
    x_isz = jnp.dtype(x2d.dtype).itemsize
    pe_isz = jnp.dtype(pe2d.dtype).itemsize
    out_isz = jnp.dtype(out_dtype).itemsize
    min_isz = min(x_isz, out_isz)
    max_isz = max(x_isz, pe_isz, out_isz)

    tb, tl = _choose_tiles(B, L, min_isz, max_isz)
    grid = (pl.cdiv(L, tl), pl.cdiv(B, tb))   # L outer -> pe DMA'd once per L tile

    # Double-buffered VMEM residency: x + out blocks, plus the (1, tl) pe block
    # which is padded to 8 sublanes in VMEM.
    resident = 2 * (tb * tl * x_isz + tb * tl * out_isz + 8 * tl * pe_isz)
    vmem_limit = int(min(48 << 20, max(32 << 20, 2 * resident)))

    kwargs = {}
    if donate_x and jnp.dtype(x2d.dtype) == jnp.dtype(out_dtype):
        # In-place add: out block (i, j) is produced only from x block (i, j),
        # so aliasing is safe and avoids a second B*L HBM buffer.
        kwargs["input_output_aliases"] = {0: 0}

    return pl.pallas_call(
        _add_pe_kernel,
        out_shape=jax.ShapeDtypeStruct((B, L), out_dtype),
        grid_spec=pl.GridSpec(
            grid=grid,
            in_specs=[
                pl.BlockSpec((tb, tl), lambda j, i: (i, j)),   # x rows
                pl.BlockSpec((1, tl), lambda j, i: (0, j)),    # pe (revisited over i)
            ],
            out_specs=pl.BlockSpec((tb, tl), lambda j, i: (i, j)),
        ),
        compiler_params=pltpu.CompilerParams(
            dimension_semantics=("parallel", "parallel"),
            vmem_limit_bytes=vmem_limit,
        ),
        cost_estimate=pl.CostEstimate(
            flops=B * L,
            transcendentals=0,
            bytes_accessed=B * L * x_isz + L * pe_isz + B * L * out_isz,
        ),
        **kwargs,
    )(x2d, pe2d)


def learned_positional_embeddings(
    x: jax.Array,
    pos_enc: jax.Array,
    *,
    min_pallas_bytes: int = 1 << 20,
    donate_x: bool = False,
) -> jax.Array:
    """x: (B, S, D), pos_enc: (1, S, D). Returns x + pos_enc (broadcast over B)."""
    B, S, D = x.shape
    assert pos_enc.shape == (1, S, D), (pos_enc.shape, (1, S, D))

    out_dtype = jnp.result_type(x.dtype, pos_enc.dtype)
    total_bytes = B * S * D * jnp.dtype(out_dtype).itemsize

    # Tiny tensors: the fused XLA broadcast add beats pallas_call dispatch +
    # per-grid-step overhead.  (Tests below force the Pallas path.)
    if total_bytes < min_pallas_bytes:
        return (x + pos_enc).astype(out_dtype)

    # Lane-dense layout: collapsing the trailing contiguous (S, D) dims is a
    # free reshape and makes the lane dim large regardless of D.  Inputs keep
    # their native dtypes; promotion happens inside the kernel.
    L = S * D
    x2d = x.reshape(B, L)
    pe2d = pos_enc.reshape(1, L)
    out2d = _pallas_add_pe(x2d, pe2d, out_dtype, donate_x)
    return out2d.reshape(B, S, D)


def _check(out, x, pos_enc):
    ref = x + pos_enc
    np.testing.assert_allclose(np.asarray(out), np.asarray(ref), rtol=1e-6, atol=1e-6)


if __name__ == "__main__":
    key = jax.random.PRNGKey(0)

    # --- Test 1: module's toy config (embed_dim=32, patches=8 -> S=9), batch=2.
    # Force the Pallas path (min_pallas_bytes=0) so the kernel itself runs.
    embed_dim, patches, batch = 32, 8, 2
    seq = patches + 1
    k1, k2, key = jax.random.split(key, 3)
    x = jax.random.normal(k1, (batch, seq, embed_dim), dtype=jnp.float32)
    # nn.Parameter(torch.zeros(...)) init is all-zeros; use a deterministic
    # random table so the add is actually exercised.
    pe = 0.02 * jax.random.normal(k2, (1, seq, embed_dim), dtype=jnp.float32)
    out = jax.block_until_ready(
        learned_positional_embeddings(x, pe, min_pallas_bytes=0)
    )
    _check(out, x, pe)

    # Default wrapper at this tiny size takes the fused-XLA path; check it too.
    out_xla = jax.block_until_ready(learned_positional_embeddings(x, pe))
    _check(out_xla, x, pe)

    # --- Test 2: both grid axes active (L tiled into 2 blocks, ragged batch
    # tail: B=36 with tb=8 -> 5 batch blocks, 10 grid steps total), f32.
    B2, S2, D2 = 36, 128, 1024
    k1, k2, key = jax.random.split(key, 3)
    x2 = jax.random.normal(k1, (B2, S2, D2), dtype=jnp.float32)
    pe2 = 0.02 * jax.random.normal(k2, (1, S2, D2), dtype=jnp.float32)
    out2 = jax.block_until_ready(learned_positional_embeddings(x2, pe2))
    _check(out2, x2, pe2)

    # --- Test 3: mixed precision (bf16 activations + f32 learned table).
    # Promotion happens in-register inside the kernel; output is f32.
    B3, S3, D3 = 32, 64, 256
    k1, k2, key = jax.random.split(key, 3)
    x3 = jax.random.normal(k1, (B3, S3, D3), dtype=jnp.bfloat16)
    pe3 = 0.02 * jax.random.normal(k2, (1, S3, D3), dtype=jnp.float32)
    out3 = jax.block_until_ready(learned_positional_embeddings(x3, pe3))
    assert out3.dtype == jnp.float32
    _check(out3, x3, pe3)

    # --- Test 4: same-dtype path with input/output aliasing (in-place add).
    B4, S4, D4 = 40, 64, 256
    k1, k2, key = jax.random.split(key, 3)
    x4 = jax.random.normal(k1, (B4, S4, D4), dtype=jnp.float32)
    pe4 = 0.02 * jax.random.normal(k2, (1, S4, D4), dtype=jnp.float32)
    ref4 = x4 + pe4  # compute reference before the (potentially aliasing) call
    out4 = jax.block_until_ready(
        learned_positional_embeddings(x4, pe4, donate_x=True)
    )
    np.testing.assert_allclose(np.asarray(out4), np.asarray(ref4), rtol=1e-6, atol=1e-6)

    print("KERNEL_OK")
</pallas_src>

<mosaic_0001>
module attributes {stable_mosaic.version = 11 : i64} {
  func.func @_add_pe_kernel(%arg0: i32, %arg1: i32, %arg2: memref<2x288xf32, #tpu.memory_space<vmem>>, %arg3: memref<1x288xf32, #tpu.memory_space<vmem>>, %arg4: memref<2x288xf32, #tpu.memory_space<vmem>>) attributes {dimension_semantics = [#tpu.dimension_semantics<parallel>, #tpu.dimension_semantics<parallel>], iteration_bounds = array<i64: 1, 1>, scalar_prefetch = 0 : i64, scratch_operands = 0 : i64, tpu.core_type = #tpu.core_type<tc>, window_params = [{transform_indices = @transform_0, window_bounds = array<i64: 2, 288>}, {transform_indices = @transform_1, window_bounds = array<i64: 1, 288>}, {transform_indices = @transform_2, window_bounds = array<i64: 2, 288>}]} {
    %c0 = arith.constant 0 : index
    %c0_0 = arith.constant 0 : index
    %0 = vector.load %arg2[%c0, %c0_0] : memref<2x288xf32, #tpu.memory_space<vmem>>, vector<2x288xf32>
    %c0_1 = arith.constant 0 : index
    %c0_2 = arith.constant 0 : index
    %1 = vector.load %arg3[%c0_1, %c0_2] : memref<1x288xf32, #tpu.memory_space<vmem>>, vector<1x288xf32>
    %2 = vector.broadcast %1 : vector<1x288xf32> to vector<2x288xf32>
    %3 = arith.addf %0, %2 : vector<2x288xf32>
    %c0_3 = arith.constant 0 : index
    %c0_4 = arith.constant 0 : index
    %4 = vector.load %arg4[%c0_3, %c0_4] : memref<2x288xf32, #tpu.memory_space<vmem>>, vector<2x288xf32>
    tpu.vector_store %arg4[%c0_3, %c0_4], %3 {strides = array<i32>} : memref<2x288xf32, #tpu.memory_space<vmem>>, vector<2x288xf32>,
    return
  }
  func.func @transform_0(%arg0: i32, %arg1: i32) -> (i32, i32) {
    %c0_i32 = arith.constant 0 : i32
    return %arg1, %arg0 : i32, i32
  }
  func.func @transform_1(%arg0: i32, %arg1: i32) -> (i32, i32) {
    %c0_i32 = arith.constant 0 : i32
    %c0_i32_0 = arith.constant 0 : i32
    return %c0_i32, %arg0 : i32, i32
  }
  func.func @transform_2(%arg0: i32, %arg1: i32) -> (i32, i32) {
    %c0_i32 = arith.constant 0 : i32
    return %arg1, %arg0 : i32, i32
  }
}

</mosaic_0001>

<bundles_post_ra>
// kernel: tpu_custom_call.1
= control target key start
LH: loop header
LB: loop body
LE: loop exit
PB: predicated region body
PF: predicated region fallthrough
CT: control target
= control target key end

     0   :  { %7 = vsyncpa [#allocation3], 0  ;;  %s174_s0 = inlined_call_operand.hbm [shape: f32[2,288], index: 0, kind: input, shape index: {}]   ;;  %s175_s1 = inlined_call_operand.vmem [shape: f32[1,288], index: 1, kind: input, shape index: {}]   ;;  %s176_s2 = inlined_call_operand.hbm [shape: f32[2,288], index: 2, kind: output, shape index: {}]  }
   0x1   :  { %8 = vsyncpa [#allocation4], 0  ;;  %s129_s9 = smov [#allocation2]   ;;  %s81_s13 = scalar_lea.hbm %s174_s0, 96 }
   0x2   :  { %s15_s10 = sshll.u32 %s129_s9, 4  ;;  %p82_p0 = scmp.ne.s32.totalorder %s174_s0, %s81_s13  ;;  %s16_s10 = int_to_ptr.vmem [resolvable:$true] %s15_s10 }
   0x3   :  { %p85_p1 = scmp.lt.u32.totalorder %s81_s13, %s174_s0 }
   0x5   :  { %p87_p2 = pnand %p85_p1, %p82_p0 }
   0x7   :  { %90 = shalt.err (!%p87_p2)
}
   0x8   :  { %s91_s18 = scalar_lea.vmem %s16_s10, 96  ;;  %p96_p4 = scmp.lt.s32.totalorder %s16_s10, %s16_s10 }
   0x9   :  { %p92_p3 = scmp.ne.s32.totalorder %s16_s10, %s91_s18  ;;  %p97_p5 = scmp.lt.s32.totalorder %s91_s18, %s91_s18 }
   0xb   :  { %p98_p6 = por %p97_p5, %p96_p4 }
   0xd   :  { %p99_p7 = pnand %p98_p6, %p92_p3 }
   0xf   :  { %102 = shalt.err (!%p99_p7)
}
  0x10   :  { %18 = dma.hbm_to_vmem [thread:$0]  %s174_s0, 96, %s16_s10, [#allocation3]  }
  0x11   :  { %125 = dma.done.wait [#allocation3], 96  }
  0x12   :  { %126 = vsyncadd [#allocation3], 4294967200  ;;  %v27_v0 = vlaneseq  ;;  %v130_v1 = vmov 1983009808   ;;  %v25_v9 = vld [vmem:[%s175_s1] sm:$0x7] }
  0x13   :  { %v41_v2 = vunpack.c.l.s4 %v130_v1  ;;  %vm57_vm0 = vcmask 1041408   ;;  %vm58_vm1 = vcmask 1043458   ;;  %vm60_vm3 = vcmask 259076   ;;  %v24_v16 = vld [vmem:[#allocation2] sm:$0x3f]  ;;  %s131_s0 = smov [#allocation5]  }
  0x14   :  { %v28_v3 = vshrl.u32 %v27_v0, 7  ;;  %vm59_vm2 = vmor %vm58_vm1, %vm57_vm0  ;;  %s69_s23 = sshll.u32 %s131_s0, 4  ;;  %s70_s23 = int_to_ptr.vmem [resolvable:$true] %s69_s23 }
  0x15   :  { %v42_v4 = vunpack.c.0.s8 %v41_v2  ;;  %vm61_vm4 = vmor %vm60_vm3, %vm59_vm2  ;;  %s103_s24 = scalar_lea.vmem %s70_s23, 96  ;;  %p108_p9 = scmp.lt.s32.totalorder %s70_s23, %s70_s23 }
  0x16   :  { %v29_v5 = vsub.s32 0, %v28_v3  ;;  %v33_v6 = vsub.s32 1, %v28_v3  ;;  %v37_v7 = vsub.s32 2, %v28_v3  ;;  %p104_p8 = scmp.ne.s32.totalorder %s70_s23, %s103_s24  ;;  %p109_p10 = scmp.lt.s32.totalorder %s103_s24, %s103_s24 }
  0x17   :  { %v45_v8 = vsub.s32 %v42_v4, %v28_v3 }
  0x18   :  { %v30_v10 = vrot.slane %v25_v9, %v29_v5  ;;  %v34_v11 = vrot.slane %v25_v9, %v33_v6  ;;  %v38_v12 = vrot.slane %v25_v9, %v37_v7  ;;  %p110_p11 = por %p109_p10, %p108_p9 }
  0x1a   :  { %v39_v13 = vcombine.low %v30_v10, %v34_v11  ;;  %v53_v14 = vrot.slane %v38_v12, %v45_v8  ;;  %p111_p12 = pnand %p110_p11, %p104_p8 }
  0x1c   :  { %v46_v15 = vrot.slane %v39_v13, %v45_v8 }
  0x1e   :  { %v54_v17 = vcombine.low %v46_v15, %v53_v14 }
  0x20   :  { %v56_v18 = vadd.f32 %v54_v17, %v24_v16 }
  0x22   :  { %62 = vst.msk [vmem:[#allocation5] sm:$0x3f] %vm61_vm4, %v56_v18 }
  0x23   :  { %114 = shalt.err (!%p111_p12)
}
  0x24   :  { %s115_s26 = scalar_lea.hbm %s176_s2, 96 }
  0x25   :  { %p116_p13 = scmp.ne.s32.totalorder %s176_s2, %s115_s26  ;;  %p119_p0 = scmp.lt.u32.totalorder %s115_s26, %s176_s2 }
  0x27   :  { %p121_p1 = pnand %p119_p0, %p116_p13 }
  0x29   :  { %124 = shalt.err (!%p121_p1)
}
  0x2a   :  { %72 = dma.vmem_to_hbm [thread:$0]  %s70_s23, 96, %s176_s2, [#allocation4]  }
  0x2b   :  { %127 = dma.done.wait [#allocation4], 96  }
  0x2c   :  { %128 = vsyncadd [#allocation4], 4294967200 }
  0x2d   :  { %76 = vsyncpa [#allocation3], 1 }
  0x2e   :  { %77 = vsyncpa [#allocation4], 1 }

</bundles_post_ra>
